<compile_context>
chip_gen: v5e
topology: v5e:2x2
jax: 0.10.0
libtpu: 0.0.40
codegen_flags: <defaults>
</compile_context>

<pallas_src>
import jax
import jax.numpy as jnp
import numpy as np
from jax.experimental import pallas as pl
from jax.experimental.pallas import tpu as pltpu

KERNEL = 3   # nn.MaxPool2d(kernel_size=3) -> stride defaults to kernel_size
STRIDE = 3


def _maxpool_kernel(x_ref, sel_ref, o_ref):
    # x_ref:   (bc_tile, H, W)
    # sel_ref: (KERNEL, W, out_w)  f32 one-hot "clamped column" selectors
    # o_ref:   (bc_tile, out_h, out_w)
    bc, h, w = x_ref.shape
    _, out_h, out_w = o_ref.shape
    n_full_h = (h - KERNEL) // STRIDE + 1 if h >= KERNEL else 0

    # ---- pool along H (sublane axis) --------------------------------------
    # Full windows: three sublane-strided loads + two full-width VPU maxima.
    pieces = []
    if n_full_h > 0:
        a0 = x_ref[:, pl.ds(0, n_full_h, stride=STRIDE), :]
        a1 = x_ref[:, pl.ds(1, n_full_h, stride=STRIDE), :]
        a2 = x_ref[:, pl.ds(2, n_full_h, stride=STRIDE), :]
        pieces.append(jnp.maximum(jnp.maximum(a0, a1), a2))
    if out_h > n_full_h:
        # ceil_mode partial last window: clamped to the rows that exist.
        lo = n_full_h * STRIDE
        pieces.append(jnp.max(x_ref[:, lo:h, :], axis=1, keepdims=True))
    y = pieces[0] if len(pieces) == 1 else jnp.concatenate(pieces, axis=1)
    # y: (bc, out_h, W)

    # ---- pool along W (lane axis) ------------------------------------------
    # z[b, i, j] = max_r y[b, i, min(j*STRIDE + r, W-1)].
    # Each shifted/clamped column gather is a one-hot selection matmul on the
    # MXU (exact in f32), so the lane shuffles never hit the VPU/XLU and the
    # ceil_mode partial window needs no special casing here.
    y32 = y.astype(jnp.float32)
    z = None
    for r in range(KERNEL):
        s_r = jnp.broadcast_to(sel_ref[r][None, :, :], (bc, w, out_w))
        z_r = jnp.einsum("bhw,bwk->bhk", y32, s_r,
                         preferred_element_type=jnp.float32)
        z = z_r if z is None else jnp.maximum(z, z_r)

    # Single full-block store (previously: out_w per-column masked stores).
    o_ref[...] = z.astype(o_ref.dtype)


def _ceil_out(dim):
    out = -(-(dim - KERNEL) // STRIDE) + 1
    if (out - 1) * STRIDE >= dim:   # PyTorch rule: drop window starting in pad
        out -= 1
    return out


def _round_up(a, m):
    return -(-a // m) * m


@jax.jit
def pony_forward(x_nchw):
    """MaxPool2d(kernel_size=3, stride=3, padding=0, ceil_mode=True) on NCHW."""
    n, c, h, w = x_nchw.shape
    out_h, out_w = _ceil_out(h), _ceil_out(w)

    bc = n * c
    x = x_nchw.reshape(bc, h, w)          # free reshape, no transpose

    # One-hot clamped-column selectors for the W (lane-axis) pooling.
    sel_np = np.zeros((KERNEL, w, out_w), dtype=np.float32)
    for r in range(KERNEL):
        for j in range(out_w):
            sel_np[r, min(j * STRIDE + r, w - 1), j] = 1.0
    sel = jnp.asarray(sel_np)

    # ---- bc tiling: biggest block that fits VMEM; split only when useful ---
    item = x.dtype.itemsize
    in_slice = _round_up(h, 8) * _round_up(w, 128) * item       # padded VMEM
    out_slice = _round_up(out_h, 8) * _round_up(out_w, 128) * item
    per_slice = in_slice + out_slice

    MAX_BLOCK = 8 << 20    # per-block cap; double-buffered in+out stays well
                           # under the 32 MiB scoped VMEM on every generation
    MIN_SPLIT = 1 << 20    # only add grid steps (v7x megacore) if each block
                           # still has >= 1 MiB of work to amortize step cost
    MAX_BC_TILE = 256      # bounds the unrolled per-channel selection matmuls

    cap = max(1, min(MAX_BLOCK // per_slice, MAX_BC_TILE))
    bc_tile = min(bc, cap)
    while bc_tile > 1 and bc % bc_tile != 0:
        bc_tile -= 1
    if (bc // bc_tile == 1 and bc_tile % 2 == 0
            and (bc_tile // 2) * per_slice >= MIN_SPLIT):
        bc_tile //= 2      # expose 2 parallel steps for v7x's two TensorCores
    # TODO(synk): add an H-axis tiling fallback (row blocks in multiples of
    # STRIDE) for feature maps whose single (1, H, W) slice exceeds MAX_BLOCK.

    grid = (bc // bc_tile,)

    cost = pl.CostEstimate(
        flops=2 * bc * out_h * w * out_w * KERNEL + 3 * bc * h * w,
        transcendentals=0,
        bytes_accessed=(bc * h * w * item + bc * out_h * out_w * item
                        + KERNEL * w * out_w * 4),
    )

    out = pl.pallas_call(
        _maxpool_kernel,
        out_shape=jax.ShapeDtypeStruct((bc, out_h, out_w), x.dtype),
        grid=grid,
        in_specs=[
            pl.BlockSpec((bc_tile, h, w), lambda b: (b, 0, 0)),
            pl.BlockSpec((KERNEL, w, out_w), lambda b: (0, 0, 0)),
        ],
        out_specs=pl.BlockSpec((bc_tile, out_h, out_w), lambda b: (b, 0, 0)),
        compiler_params=pltpu.CompilerParams(
            dimension_semantics=("parallel",),
            vmem_limit_bytes=32 << 20,
        ),
        cost_estimate=cost,
    )(x, sel)

    return out.reshape(n, c, out_h, out_w)   # free reshape back to NCHW


def _reference_maxpool(x_nchw, out_h, out_w):
    xn = np.asarray(x_nchw)
    n, c, h, w = xn.shape
    ref = np.empty((n, c, out_h, out_w), dtype=xn.dtype)
    for i in range(out_h):
        for j in range(out_w):
            hi0, wi0 = i * STRIDE, j * STRIDE
            ref[:, :, i, j] = xn[:, :, hi0:min(hi0 + KERNEL, h),
                                 wi0:min(wi0 + KERNEL, w)].max(axis=(2, 3))
    return ref


if __name__ == "__main__":
    key = jax.random.PRNGKey(0)
    # NCHW input, matching nn.MaxPool2d expectations.
    x = jax.random.normal(key, (2, 4, 16, 16), dtype=jnp.float32)

    out = jax.block_until_ready(pony_forward(x))

    # Expected ceil-mode output for H=W=16, k=s=3: 6x6.
    assert out.shape == (2, 4, 6, 6), out.shape

    ref = _reference_maxpool(x, 6, 6)
    np.testing.assert_allclose(np.asarray(out), ref, rtol=0, atol=0)

    print("KERNEL_OK")
</pallas_src>

<mosaic_0001>
module attributes {stable_mosaic.version = 11 : i64} {
  func.func @_maxpool_kernel(%arg0: i32, %arg1: memref<8x16x16xf32, #tpu.memory_space<vmem>>, %arg2: memref<3x16x6xf32, #tpu.memory_space<vmem>>, %arg3: memref<8x6x6xf32, #tpu.memory_space<vmem>>) attributes {dimension_semantics = [#tpu.dimension_semantics<parallel>], iteration_bounds = array<i64: 1>, scalar_prefetch = 0 : i64, scratch_operands = 0 : i64, tpu.core_type = #tpu.core_type<tc>, window_params = [{transform_indices = @transform_0, window_bounds = array<i64: 8, 16, 16>}, {pipeline_mode = #tpu.pipeline_mode<synchronous>, transform_indices = @transform_1, window_bounds = array<i64: 3, 16, 6>}, {transform_indices = @transform_2, window_bounds = array<i64: 8, 6, 6>}]} {
    %c0 = arith.constant 0 : index
    %c0_0 = arith.constant 0 : index
    %c0_1 = arith.constant 0 : index
    %0 = tpu.strided_load %arg1[%c0, %c0_0, %c0_1] {strides = array<i32: 1, 3, 1>} : memref<8x16x16xf32, #tpu.memory_space<vmem>>, vector<8x5x16xf32>
    %c0_2 = arith.constant 0 : index
    %c1 = arith.constant 1 : index
    %c0_3 = arith.constant 0 : index
    %1 = tpu.strided_load %arg1[%c0_2, %c1, %c0_3] {strides = array<i32: 1, 3, 1>} : memref<8x16x16xf32, #tpu.memory_space<vmem>>, vector<8x5x16xf32>
    %c0_4 = arith.constant 0 : index
    %c2 = arith.constant 2 : index
    %c0_5 = arith.constant 0 : index
    %2 = tpu.strided_load %arg1[%c0_4, %c2, %c0_5] {strides = array<i32: 1, 3, 1>} : memref<8x16x16xf32, #tpu.memory_space<vmem>>, vector<8x5x16xf32>
    %3 = arith.maximumf %0, %1 : vector<8x5x16xf32>
    %4 = arith.maximumf %3, %2 : vector<8x5x16xf32>
    %c0_6 = arith.constant 0 : index
    %c15 = arith.constant 15 : index
    %c0_7 = arith.constant 0 : index
    %5 = vector.load %arg1[%c0_6, %c15, %c0_7] : memref<8x16x16xf32, #tpu.memory_space<vmem>>, vector<8x1x16xf32>
    %cst = arith.constant dense<0xFF800000> : vector<8x16xf32>
    %6 = vector.multi_reduction <maximumf>, %5, %cst [1] : vector<8x1x16xf32> to vector<8x16xf32>
    %7 = vector.shape_cast %6 : vector<8x16xf32> to vector<8x1x16xf32>
    %8 = tpu.concatenate %4, %7 in 1 : vector<8x5x16xf32>, vector<8x1x16xf32> -> vector<8x6x16xf32>
    %c0_8 = arith.constant 0 : index
    %c0_9 = arith.constant 0 : index
    %c0_10 = arith.constant 0 : index
    %9 = vector.load %arg2[%c0_8, %c0_9, %c0_10] : memref<3x16x6xf32, #tpu.memory_space<vmem>>, vector<1x16x6xf32>
    %10 = vector.shape_cast %9 : vector<1x16x6xf32> to vector<16x6xf32>
    %11 = vector.shape_cast %10 : vector<16x6xf32> to vector<1x16x6xf32>
    %12 = vector.shape_cast %11 : vector<1x16x6xf32> to vector<1x16x6xf32>
    %13 = vector.broadcast %12 : vector<1x16x6xf32> to vector<8x16x6xf32>
    "tpu.trace_start"() <{level = 10 : i32, message = "bhw,bwk->bhk"}> : () -> ()
    %cst_11 = arith.constant dense<0.000000e+00> : vector<8x6x6xf32>
    %14 = tpu.matmul %8, %13, %cst_11 {dimension_numbers = #tpu.dot_dimension_numbers<[2], [1], [1], [2], [0, 0, 0, 1, 1, 2], [0], [0]>} : vector<8x6x16xf32>, vector<8x16x6xf32>, vector<8x6x6xf32> -> vector<8x6x6xf32>
    "tpu.trace_stop"() : () -> ()
    %c1_12 = arith.constant 1 : index
    %c0_13 = arith.constant 0 : index
    %c0_14 = arith.constant 0 : index
    %15 = vector.load %arg2[%c1_12, %c0_13, %c0_14] : memref<3x16x6xf32, #tpu.memory_space<vmem>>, vector<1x16x6xf32>
    %16 = vector.shape_cast %15 : vector<1x16x6xf32> to vector<16x6xf32>
    %17 = vector.shape_cast %16 : vector<16x6xf32> to vector<1x16x6xf32>
    %18 = vector.shape_cast %17 : vector<1x16x6xf32> to vector<1x16x6xf32>
    %19 = vector.broadcast %18 : vector<1x16x6xf32> to vector<8x16x6xf32>
    "tpu.trace_start"() <{level = 10 : i32, message = "bhw,bwk->bhk"}> : () -> ()
    %cst_15 = arith.constant dense<0.000000e+00> : vector<8x6x6xf32>
    %20 = tpu.matmul %8, %19, %cst_15 {dimension_numbers = #tpu.dot_dimension_numbers<[2], [1], [1], [2], [0, 0, 0, 1, 1, 2], [0], [0]>} : vector<8x6x16xf32>, vector<8x16x6xf32>, vector<8x6x6xf32> -> vector<8x6x6xf32>
    "tpu.trace_stop"() : () -> ()
    %21 = arith.maximumf %14, %20 : vector<8x6x6xf32>
    %c2_16 = arith.constant 2 : index
    %c0_17 = arith.constant 0 : index
    %c0_18 = arith.constant 0 : index
    %22 = vector.load %arg2[%c2_16, %c0_17, %c0_18] : memref<3x16x6xf32, #tpu.memory_space<vmem>>, vector<1x16x6xf32>
    %23 = vector.shape_cast %22 : vector<1x16x6xf32> to vector<16x6xf32>
    %24 = vector.shape_cast %23 : vector<16x6xf32> to vector<1x16x6xf32>
    %25 = vector.shape_cast %24 : vector<1x16x6xf32> to vector<1x16x6xf32>
    %26 = vector.broadcast %25 : vector<1x16x6xf32> to vector<8x16x6xf32>
    "tpu.trace_start"() <{level = 10 : i32, message = "bhw,bwk->bhk"}> : () -> ()
    %cst_19 = arith.constant dense<0.000000e+00> : vector<8x6x6xf32>
    %27 = tpu.matmul %8, %26, %cst_19 {dimension_numbers = #tpu.dot_dimension_numbers<[2], [1], [1], [2], [0, 0, 0, 1, 1, 2], [0], [0]>} : vector<8x6x16xf32>, vector<8x16x6xf32>, vector<8x6x6xf32> -> vector<8x6x6xf32>
    "tpu.trace_stop"() : () -> ()
    %28 = arith.maximumf %21, %27 : vector<8x6x6xf32>
    %c0_20 = arith.constant 0 : index
    %c0_21 = arith.constant 0 : index
    %c0_22 = arith.constant 0 : index
    %29 = vector.load %arg3[%c0_20, %c0_21, %c0_22] : memref<8x6x6xf32, #tpu.memory_space<vmem>>, vector<8x6x6xf32>
    tpu.vector_store %arg3[%c0_20, %c0_21, %c0_22], %28 {strides = array<i32>} : memref<8x6x6xf32, #tpu.memory_space<vmem>>, vector<8x6x6xf32>,
    return
  }
  func.func @transform_0(%arg0: i32) -> (i32, i32, i32) {
    %c0_i32 = arith.constant 0 : i32
    %c0_i32_0 = arith.constant 0 : i32
    %c0_i32_1 = arith.constant 0 : i32
    return %arg0, %c0_i32, %c0_i32_0 : i32, i32, i32
  }
  func.func @transform_1(%arg0: i32) -> (i32, i32, i32) {
    %c0_i32 = arith.constant 0 : i32
    %c0_i32_0 = arith.constant 0 : i32
    %c0_i32_1 = arith.constant 0 : i32
    %c0_i32_2 = arith.constant 0 : i32
    return %c0_i32, %c0_i32_0, %c0_i32_1 : i32, i32, i32
  }
  func.func @transform_2(%arg0: i32) -> (i32, i32, i32) {
    %c0_i32 = arith.constant 0 : i32
    %c0_i32_0 = arith.constant 0 : i32
    %c0_i32_1 = arith.constant 0 : i32
    return %arg0, %c0_i32, %c0_i32_0 : i32, i32, i32
  }
}

</mosaic_0001>

<bundles_post_ra>
// kernel: pony_forward.1
= control target key start
LH: loop header
LB: loop body
LE: loop exit
PB: predicated region body
PF: predicated region fallthrough
CT: control target
= control target key end

     0   :  { %7 = vsyncpa [#allocation3], 0  ;;  %s895_s0 = inlined_call_operand.hbm [shape: f32[8,16,16], index: 0, kind: input, shape index: {}]   ;;  %s896_s1 = inlined_call_operand.hbm [shape: f32[3,16,6], index: 1, kind: input, shape index: {}]   ;;  %s897_s2 = inlined_call_operand.vmem [shape: f32[8,6,6], index: 2, kind: output, shape index: {}]  }
   0x1   :  { %s13_s11 = sshll.u32 %s895_s0, 4  ;;  %s14_s11 = int_to_ptr.hbm [resolvable:$true] %s13_s11 }
   0x2   :  { %8 = vsyncpa [#allocation5], 0  ;;  %s771_s12 = smov [#allocation2]   ;;  %s26_s16 = sshll.u32 %s896_s1, 4  ;;  %s27_s16 = int_to_ptr.hbm [resolvable:$true] %s26_s16 }
   0x3   :  { %s15_s13 = sshll.u32 %s771_s12, 4  ;;  %s772_s17 = smov 128   ;;  %s16_s13 = int_to_ptr.vmem [resolvable:$true] %s15_s13 }
   0x4   :  { %s773_s18 = smov 8   ;;  %s774_s19 = smov [#allocation4]  }
   0x5   :  { %21 = dma.hbm_to_vmem [thread:$0]  %s14_s11, 2048, %s16_s13, [#allocation3], %s772_s17, %s772_s17, %s773_s18  }
   0x6   :  { %s28_s20 = sshll.u32 %s774_s19, 4  ;;  %s29_s20 = int_to_ptr.vmem [resolvable:$true] %s28_s20 }
   0x7   :  { %34 = dma.hbm_to_vmem [thread:$0]  %s27_s16, 768, %s29_s20, [#allocation5], %s772_s17, %s772_s17, %s773_s18  }
   0x8   :  { %767 = dma.done.wait [#allocation3], 2048  }
   0x9   :  { %768 = vsyncadd [#allocation3], 4294965248 }
   0xa   :  { %769 = dma.done.wait [#allocation5], 768  }
   0xb   :  { %770 = vsyncadd [#allocation5], 4294966528  ;;  %v148_v0 = vld [vmem:[#allocation4 + $0x8] sm:$0xff]  ;;  %v147_v1 = vld [vmem:[#allocation4] sm:$0xff]  ;;  %vm138_vm0 = vcmask 1044480   ;;  %vm149_vm1 = vcmask 130048  }
   0xc   :  { %v43_v2 = vld [vmem:[#allocation2] ss:$3 sm:$0x1f]  ;;  %167 = vmatpush.msra.mxu0 %v148_v0  ;;  %190 = vmatpush.msra.mxu1 %v148_v0  ;;  %v59_v3 = vld [vmem:[#allocation2 + $0x1] ss:$3 sm:$0x1f] }
   0xd   :  { %v75_v4 = vld [vmem:[#allocation2 + $0x2] ss:$3 sm:$0x1f]  ;;  %213 = vmatpush.msra.mxu2 %v148_v0  ;;  %236 = vmatpush.msra.mxu3 %v148_v0  ;;  %v90_v5 = vmax.f32 %v43_v2, %v59_v3  ;;  %v106_v6 = vld [vmem:[#allocation2 + $0xf] sm:$0x1]  ;;  %v796_v16 = vld [vmem:[#allocation4 + $0x18] sm:$0xff] }
   0xe   :  { %v45_v7 = vld [vmem:[#allocation2 + $0x10] ss:$3 sm:$0x1f]  ;;  %168 = vmatpush.msra.mxu0 %v147_v1  ;;  %191 = vmatpush.msra.mxu1 %v147_v1  ;;  %v122_v8 = vrot.slane %v106_v6, 3  ;;  %v107_v10 = vld [vmem:[#allocation2 + $0x1f] sm:$0x1] }
   0xf   :  { %v61_v9 = vld [vmem:[#allocation2 + $0x11] ss:$3 sm:$0x1f]  ;;  %214 = vmatpush.msra.mxu2 %v147_v1  ;;  %237 = vmatpush.msra.mxu3 %v147_v1  ;;  %v98_v11 = vmax.f32 %v90_v5, %v75_v4  ;;  %v77_v12 = vld [vmem:[#allocation2 + $0x12] ss:$3 sm:$0x1f] }
  0x10   :  { %v91_v13 = vmax.f32 %v45_v7, %v61_v9  ;;  %v123_v14 = vrot.slane %v107_v10, 3  ;;  %v108_v15 = vld [vmem:[#allocation2 + $0x2f] sm:$0x1]  ;;  %v47_v17 = vld [vmem:[#allocation2 + $0x20] ss:$3 sm:$0x1f]  ;;  %259 = vmatpush.msrb.mxu0 %v148_v0  ;;  %282 = vmatpush.msrb.mxu1 %v148_v0 }
  0x11   :  { %v63_v18 = vld [vmem:[#allocation2 + $0x21] ss:$3 sm:$0x1f]  ;;  %305 = vmatpush.msrb.mxu2 %v148_v0  ;;  %328 = vmatpush.msrb.mxu3 %v148_v0  ;;  %v799_v19 = vsel %vm138_vm0, %v98_v11, %v122_v8  ;;  %v79_v21 = vld [vmem:[#allocation2 + $0x22] ss:$3 sm:$0x1f] }
  0x12   :  { %v99_v20 = vmax.f32 %v91_v13, %v77_v12  ;;  %v92_v22 = vmax.f32 %v47_v17, %v63_v18  ;;  %v124_v23 = vrot.slane %v108_v15, 3  ;;  %v109_v24 = vld [vmem:[#allocation2 + $0x3f] sm:$0x1]  ;;  %691 = vmatmul.msk.f32.vlgmr.msra.gmra.mxu0 %vm149_vm1, %v799_v19  ;;  %v49_v25 = vld [vmem:[#allocation2 + $0x30] ss:$3 sm:$0x1f]  ;;  %283 = vmatpush.msrb.mxu1 %v147_v1 }
  0x13   :  { %v65_v26 = vld [vmem:[#allocation2 + $0x31] ss:$3 sm:$0x1f]  ;;  %306 = vmatpush.msrb.mxu2 %v147_v1  ;;  %v81_v29 = vld [vmem:[#allocation2 + $0x32] ss:$3 sm:$0x1f]  ;;  %329 = vmatpush.msrb.mxu3 %v147_v1 }
  0x14   :  { %v804_v27 = vsel %vm138_vm0, %v99_v20, %v123_v14  ;;  %v100_v28 = vmax.f32 %v92_v22, %v79_v21  ;;  %v93_v30 = vmax.f32 %v49_v25, %v65_v26  ;;  %v125_v31 = vrot.slane %v109_v24, 3  ;;  %260 = vmatpush.msrb.mxu0 %v147_v1  ;;  %v110_v32 = vld [vmem:[#allocation2 + $0x4f] sm:$0x1]  ;;  %v51_v33 = vld [vmem:[#allocation2 + $0x40] ss:$3 sm:$0x1f] }
  0x15   :  { %692 = vmatmul.msk.f32.vlgmr.msra.gmra.mxu1 %vm149_vm1, %v804_v27  ;;  %v67_v34 = vld [vmem:[#allocation2 + $0x41] ss:$3 sm:$0x1f]  ;;  %v83_v37 = vld [vmem:[#allocation2 + $0x42] ss:$3 sm:$0x1f] }
  0x16   :  { %351 = vmatpush.msra.mxu0 %v796_v16  ;;  %v810_v35 = vsel %vm138_vm0, %v100_v28, %v124_v23  ;;  %v101_v36 = vmax.f32 %v93_v30, %v81_v29  ;;  %v94_v38 = vmax.f32 %v51_v33, %v67_v34  ;;  %v126_v39 = vrot.slane %v110_v32, 3  ;;  %v111_v40 = vld [vmem:[#allocation2 + $0x5f] sm:$0x1]  ;;  %v53_v41 = vld [vmem:[#allocation2 + $0x50] ss:$3 sm:$0x1f]  ;;  %371 = vmatpush.msra.mxu1 %v796_v16 }
  0x17   :  { %693 = vmatmul.msk.f32.vlgmr.msra.gmra.mxu2 %vm149_vm1, %v810_v35  ;;  %v69_v42 = vld [vmem:[#allocation2 + $0x51] ss:$3 sm:$0x1f]  ;;  %v85_v45 = vld [vmem:[#allocation2 + $0x52] ss:$3 sm:$0x1f] }
  0x18   :  { %v816_v43 = vsel %vm138_vm0, %v101_v36, %v125_v31  ;;  %v102_v44 = vmax.f32 %v94_v38, %v83_v37  ;;  %v95_v46 = vmax.f32 %v53_v41, %v69_v42  ;;  %v127_v47 = vrot.slane %v111_v40, 3  ;;  %v112_v48 = vld [vmem:[#allocation2 + $0x6f] sm:$0x1]  ;;  %391 = vmatpush.msra.mxu2 %v796_v16  ;;  %v55_v49 = vld [vmem:[#allocation2 + $0x60] ss:$3 sm:$0x1f] }
  0x19   :  { %694 = vmatmul.msk.f32.vlgmr.msra.gmra.mxu3 %vm149_vm1, %v816_v43  ;;  %v71_v50 = vld [vmem:[#allocation2 + $0x61] ss:$3 sm:$0x1f]  ;;  %v87_v53 = vld [vmem:[#allocation2 + $0x62] ss:$3 sm:$0x1f] }
  0x1a   :  { %v822_v51 = vsel %vm138_vm0, %v102_v44, %v126_v39  ;;  %v103_v52 = vmax.f32 %v95_v46, %v85_v45  ;;  %v96_v54 = vmax.f32 %v55_v49, %v71_v50  ;;  %v128_v55 = vrot.slane %v112_v48, 3  ;;  %v113_v56 = vld [vmem:[#allocation2 + $0x7f] sm:$0x1]  ;;  %411 = vmatpush.msra.mxu3 %v796_v16  ;;  %v57_v57 = vld [vmem:[#allocation2 + $0x70] ss:$3 sm:$0x1f] }
  0x1b   :  { %695 = vmatmul.msk.f32.vlgmr.msrb.gmra.mxu0 %vm149_vm1, %v822_v51  ;;  %v73_v58 = vld [vmem:[#allocation2 + $0x71] ss:$3 sm:$0x1f]  ;;  %v89_v61 = vld [vmem:[#allocation2 + $0x72] ss:$3 sm:$0x1f] }
  0x1c   :  { %v144_v59 = vsel %vm138_vm0, %v103_v52, %v127_v47  ;;  %v104_v60 = vmax.f32 %v96_v54, %v87_v53  ;;  %v97_v62 = vmax.f32 %v57_v57, %v73_v58  ;;  %v129_v63 = vrot.slane %v113_v56, 3  ;;  %v335_v0 = vld [vmem:[#allocation4 + $0x10] sm:$0xff]  ;;  %v507_v4 = vld [vmem:[#allocation4 + $0x28] sm:$0xff]  ;;  %v506_v5 = vld [vmem:[#allocation4 + $0x20] sm:$0xff] }
  0x1d   :  { %696 = vmatmul.msk.f32.vlgmr.msrb.gmra.mxu1 %vm149_vm1, %v144_v59  ;;  %392 = vmatpush.msra.mxu2 %v335_v0  ;;  %vm676_vm2 = vcmask 46080  }
  0x1e   :  { %v145_v1 = vsel %vm138_vm0, %v104_v60, %v128_v55  ;;  %v105_v2 = vmax.f32 %v97_v62, %v89_v61  ;;  %412 = vmatpush.msra.mxu3 %v335_v0  ;;  %352 = vmatpush.msra.mxu0 %v335_v0 }
  0x1f   :  { %697 = vmatmul.msk.f32.vlgmr.msrb.gmra.mxu2 %vm149_vm1, %v145_v1  ;;  %372 = vmatpush.msra.mxu1 %v335_v0 }
  0x20   :  { %v146_v3 = vsel %vm138_vm0, %v105_v2, %v129_v63  ;;  %471 = vmatpush.msrb.mxu2 %v796_v16  ;;  %431 = vmatpush.msrb.mxu0 %v796_v16 }
  0x21   :  { %698 = vmatmul.msk.f32.vlgmr.msrb.gmra.mxu3 %vm149_vm1, %v146_v3  ;;  %451 = vmatpush.msrb.mxu1 %v796_v16 }
  0x22   :  { %491 = vmatpush.msrb.mxu3 %v796_v16  ;;  %472 = vmatpush.msrb.mxu2 %v335_v0 }
  0x23   :  { %699 = vmatmul.msk.f32.vlgmr.msra.gmra.mxu0 %vm149_vm1, %v799_v19  ;;  %452 = vmatpush.msrb.mxu1 %v335_v0 }
  0x24   :  { %492 = vmatpush.msrb.mxu3 %v335_v0  ;;  %432 = vmatpush.msrb.mxu0 %v335_v0 }
  0x25   :  { %700 = vmatmul.msk.f32.vlgmr.msra.gmra.mxu1 %vm149_vm1, %v804_v27 }
  0x26   :  { %522 = vmatpush.msra.mxu0 %v507_v4  ;;  %542 = vmatpush.msra.mxu1 %v507_v4 }
  0x27   :  { %701 = vmatmul.msk.f32.vlgmr.msra.gmra.mxu2 %vm149_vm1, %v810_v35 }
  0x28   :  { %523 = vmatpush.msra.mxu0 %v506_v5  ;;  %562 = vmatpush.msra.mxu2 %v507_v4 }
  0x29   :  { %543 = vmatpush.msra.mxu1 %v506_v5  ;;  %702 = vmatmul.msk.f32.vlgmr.msra.gmra.mxu3 %vm149_vm1, %v816_v43 }
  0x2a   :  { %582 = vmatpush.msra.mxu3 %v507_v4  ;;  %563 = vmatpush.msra.mxu2 %v506_v5 }
  0x2b   :  { %703 = vmatmul.msk.f32.vlgmr.msrb.gmra.mxu0 %vm149_vm1, %v822_v51 }
  0x2c   :  { %583 = vmatpush.msra.mxu3 %v506_v5  ;;  %602 = vmatpush.msrb.mxu0 %v507_v4 }
  0x2d   :  { %704 = vmatmul.msk.f32.vlgmr.msrb.gmra.mxu1 %vm149_vm1, %v144_v59 }
  0x2e   :  { %622 = vmatpush.msrb.mxu1 %v507_v4  ;;  %603 = vmatpush.msrb.mxu0 %v506_v5 }
  0x2f   :  { %705 = vmatmul.msk.f32.vlgmr.msrb.gmra.mxu2 %vm149_vm1, %v145_v1 }
  0x30   :  { %642 = vmatpush.msrb.mxu2 %v507_v4  ;;  %623 = vmatpush.msrb.mxu1 %v506_v5 }
  0x31   :  { %706 = vmatmul.msk.f32.vlgmr.msrb.gmra.mxu3 %vm149_vm1, %v146_v3 }
  0x32   :  { %662 = vmatpush.msrb.mxu3 %v507_v4  ;;  %643 = vmatpush.msrb.mxu2 %v506_v5 }
  0x33   :  { %707 = vmatmul.msk.f32.vlgmr.msra.gmra.mxu0 %vm149_vm1, %v799_v19 }
  0x34   :  { %663 = vmatpush.msrb.mxu3 %v506_v5 }
  0x35   :  { %708 = vmatmul.msk.f32.vlgmr.msra.gmra.mxu1 %vm149_vm1, %v804_v27 }
  0x37   :  { %709 = vmatmul.msk.f32.vlgmr.msra.gmra.mxu2 %vm149_vm1, %v810_v35 }
  0x39   :  { %710 = vmatmul.msk.f32.vlgmr.msra.gmra.mxu3 %vm149_vm1, %v816_v43 }
  0x3b   :  { %711 = vmatmul.msk.f32.vlgmr.msrb.gmra.mxu0 %vm149_vm1, %v822_v51 }
  0x3d   :  { %712 = vmatmul.msk.f32.vlgmr.msrb.gmra.mxu1 %vm149_vm1, %v144_v59 }
  0x3f   :  { %713 = vmatmul.msk.f32.vlgmr.msrb.gmra.mxu2 %vm149_vm1, %v145_v1 }
  0x41   :  { %714 = vmatmul.msk.f32.vlgmr.msrb.gmra.mxu3 %vm149_vm1, %v146_v3 }
  0x8f   :  { %v170_v6 = vpop.f32.mrf.mxu0 }
  0x92   :  { %v193_v7 = vpop.f32.mrf.mxu1 }
  0x98   :  { %v262_v8 = vpop.f32.mrf.mxu0 }
  0x9a   :  { %v216_v9 = vpop.f32.mrf.mxu2  ;;  %v285_v10 = vpop.f32.mrf.mxu1 }
  0x9c   :  { %v239_v11 = vpop.f32.mrf.mxu3 }
  0xa0   :  { %v354_v12 = vpop.f32.mrf.mxu0 }
  0xa1   :  { %v497_v20 = vmax.f32 %v170_v6, %v354_v12 }
  0xa2   :  { %v308_v13 = vpop.f32.mrf.mxu2  ;;  %v374_v14 = vpop.f32.mrf.mxu1 }
  0xa3   :  { %v498_v22 = vmax.f32 %v193_v7, %v374_v14 }
  0xa4   :  { %v331_v15 = vpop.f32.mrf.mxu3 }
  0xa8   :  { %v434_v16 = vpop.f32.mrf.mxu0 }
  0xa9   :  { %v501_v28 = vmax.f32 %v262_v8, %v434_v16 }
  0xaa   :  { %v394_v17 = vpop.f32.mrf.mxu2  ;;  %v454_v18 = vpop.f32.mrf.mxu1 }
  0xab   :  { %v499_v30 = vmax.f32 %v216_v9, %v394_v17  ;;  %v502_v31 = vmax.f32 %v285_v10, %v454_v18 }
  0xac   :  { %v414_v19 = vpop.f32.mrf.mxu3 }
  0xad   :  { %v500_v35 = vmax.f32 %v239_v11, %v414_v19 }
  0xb0   :  { %v525_v21 = vpop.f32.mrf.mxu0 }
  0xb1   :  { %v668_v23 = vmax.f32 %v497_v20, %v525_v21 }
  0xb2   :  { %v474_v24 = vpop.f32.mrf.mxu2  ;;  %v545_v25 = vpop.f32.mrf.mxu1 }
  0xb3   :  { %677 = vst.msk [vmem:[%s897_s2] sm:$0x3f] %vm676_vm2, %v668_v23  ;;  %v669_v26 = vmax.f32 %v498_v22, %v545_v25  ;;  %v503_v40 = vmax.f32 %v308_v13, %v474_v24 }
  0xb4   :  { %v494_v27 = vpop.f32.mrf.mxu3 }
  0xb5   :  { %678 = vst.msk [vmem:[%s897_s2 + $0x8] sm:$0x3f] %vm676_vm2, %v669_v26  ;;  %v504_v42 = vmax.f32 %v331_v15, %v494_v27 }
  0xb8   :  { %v605_v29 = vpop.f32.mrf.mxu0 }
  0xb9   :  { %v672_v32 = vmax.f32 %v501_v28, %v605_v29 }
  0xba   :  { %v565_v33 = vpop.f32.mrf.mxu2  ;;  %v625_v34 = vpop.f32.mrf.mxu1 }
  0xbb   :  { %v670_v36 = vmax.f32 %v499_v30, %v565_v33  ;;  %681 = vst.msk [vmem:[%s897_s2 + $0x20] sm:$0x3f] %vm676_vm2, %v672_v32  ;;  %v673_v37 = vmax.f32 %v502_v31, %v625_v34 }
  0xbc   :  { %v585_v38 = vpop.f32.mrf.mxu3 }
  0xbd   :  { %679 = vst.msk [vmem:[%s897_s2 + $0x10] sm:$0x3f] %vm676_vm2, %v670_v36  ;;  %v671_v39 = vmax.f32 %v500_v35, %v585_v38 }
  0xbe   :  { %682 = vst.msk [vmem:[%s897_s2 + $0x28] sm:$0x3f] %vm676_vm2, %v673_v37 }
  0xbf   :  { %680 = vst.msk [vmem:[%s897_s2 + $0x18] sm:$0x3f] %vm676_vm2, %v671_v39 }
  0xc2   :  { %v645_v41 = vpop.f32.mrf.mxu2 }
  0xc3   :  { %v674_v43 = vmax.f32 %v503_v40, %v645_v41 }
  0xc4   :  { %v665_v44 = vpop.f32.mrf.mxu3 }
  0xc5   :  { %683 = vst.msk [vmem:[%s897_s2 + $0x30] sm:$0x3f] %vm676_vm2, %v674_v43  ;;  %v675_v45 = vmax.f32 %v504_v42, %v665_v44 }
  0xc7   :  { %684 = vst.msk [vmem:[%s897_s2 + $0x38] sm:$0x3f] %vm676_vm2, %v675_v45 }
  0xc8   :  { %689 = vsyncpa [#allocation3], 1 }
  0xc9   :  { %690 = vsyncpa [#allocation5], 1 }

</bundles_post_ra>
